<compile_context>
chip_gen: v7x
topology: tpu7x:2x2x1
jax: 0.10.0
libtpu: 0.0.40
codegen_flags: <defaults>
</compile_context>

<pallas_src>
import math

import jax
import jax.numpy as jnp
from jax.experimental import pallas as pl
from jax.experimental.pallas import tpu as pltpu


def _cdiv(a: int, b: int) -> int:
    return -(-a // b)


def _tpu_generation():
    """Best-effort (generation tag, TensorCores per chip); conservative on unknowns."""
    try:
        kind = jax.devices()[0].device_kind.lower()
    except Exception:
        return "unknown", 1
    if "v5e" in kind or "v5 lite" in kind or "v5lite" in kind:
        return "v5e", 1
    if "v6" in kind:
        return "v6e", 1
    if "v7" in kind:
        return "v7x", 2
    return "unknown", 1


# ---------------------------------------------------------------------------
# Kernels
# ---------------------------------------------------------------------------

def _fold_kernel(x_ref, w_ref, o_ref):
    # x: (tn, k_fold), w: (k_fold, k_fold*d) block-diagonal weight.
    # The MXU does replicate + scale in one pass; only cos stays on VPU/EUP.
    prod = jnp.dot(x_ref[...], w_ref[...], preferred_element_type=jnp.float32)
    o_ref[...] = jnp.cos(prod).astype(o_ref.dtype)


def _broadcast_kernel(x_ref, w_ref, o_ref):
    # Fallback when no lane-dense fold applies.
    # x: (tn, 1), w: (1, d) -> lane-broadcast multiply (VPU) + cos (EUP).
    o_ref[...] = jnp.cos(x_ref[...] * w_ref[...]).astype(o_ref.dtype)


# ---------------------------------------------------------------------------
# Tiling
# ---------------------------------------------------------------------------

# Live-VMEM budget for the pipelined buffers (double-buffered output tile +
# lane-padded x tile), per generation.  Physical VMEM: v5e/v6e 128 MiB,
# v7x 64 MiB; scoped defaults are 16 / 32 / 32 MiB, overridden below via
# vmem_limit_bytes.
_LIVE_BUDGET = {
    "v5e": 18 << 20,      # ~4.5 MiB output tiles
    "v6e": 40 << 20,      # ~10 MiB output tiles
    "v7x": 40 << 20,      # ~10 MiB output tiles, well under 64 MiB physical
    "unknown": 24 << 20,
}


def _pick_tile_n(num_rows: int, lane_d: int, gen: str, n_cores: int) -> int:
    # Per tile row, per double-buffered set: output row (lane_d f32) plus the
    # x row, which is lane-padded to 128 in VMEM regardless of k_fold.
    bytes_per_row = 2 * 4 * (lane_d + 128)
    tn = max(8, _LIVE_BUDGET.get(gen, _LIVE_BUDGET["unknown"]) // bytes_per_row)
    tn = min(tn, num_rows)

    # Multi-TensorCore chips only: split into an even multiple of the core
    # count (>= 2 steps per TC) so the "parallel" grid axis shards evenly.
    # Only worth it when each core gets a few MiB of output to write.
    if n_cores > 1 and num_rows * lane_d * 4 >= n_cores * (4 << 20):
        steps = max(_cdiv(num_rows, tn), 2 * n_cores)
        steps = _cdiv(steps, n_cores) * n_cores
        tn = min(tn, _cdiv(num_rows, steps))

    return max(8, ((min(tn, num_rows) + 7) // 8) * 8)


# ---------------------------------------------------------------------------
# Wrapper
# ---------------------------------------------------------------------------

def temporal_encoding(x: jax.Array, weight: jax.Array, *,
                      out_dtype=jnp.float32) -> jax.Array:
    """x: any shape (flattened internally). weight: (1, d). Returns (N, d)."""
    d = int(weight.shape[-1])
    w = weight.astype(jnp.float32).reshape(1, d)
    x_flat = x.reshape(-1).astype(jnp.float32)
    n = int(x_flat.shape[0])

    gen, n_cores = _tpu_generation()

    # Smallest fold k with (k*d) % 128 == 0 (k = 128 // gcd(d, 128)), capped
    # so the block-diagonal weight / output tiles stay small.
    k_fold = 128 // math.gcd(d, 128)
    if k_fold * d > 2048:
        k_fold = 1
    lane_d = k_fold * d

    num_rows = _cdiv(n, k_fold)
    total = num_rows * k_fold
    if total != n:
        # Tiny (< k_fold element) pad; the cos(0)=1 rows are sliced off below.
        # TODO(synk): for ragged N the final y[:n] slice costs one extra XLA
        # copy of the output; feed N as a multiple of k_fold to avoid it.
        x_flat = jnp.pad(x_flat, (0, total - n))
    x2 = x_flat.reshape(num_rows, k_fold)

    if k_fold > 1:
        # Block-diagonal weight: row j carries `weight` in columns [j*d, (j+1)*d).
        eye = jnp.eye(k_fold, dtype=jnp.float32)
        w_in = (eye[:, :, None] * w[None, :, :]).reshape(k_fold, lane_d)
        kernel = _fold_kernel
        w_block = (k_fold, lane_d)
    else:
        w_in = w
        kernel = _broadcast_kernel
        w_block = (1, d)

    tn = _pick_tile_n(num_rows, lane_d, gen, n_cores)
    grid = (_cdiv(num_rows, tn),)

    # Exact live footprint (double-buffered out + lane-padded x + weight) plus
    # margin; explicitly overrides the scoped VMEM default (16 MiB on v5e,
    # 32 MiB on v6e/v7x) and stays below v7x's 64 MiB physical VMEM.
    out_itemsize = jnp.dtype(out_dtype).itemsize
    live_bytes = 2 * tn * (4 * 128 + out_itemsize * lane_d) + 2 * 4 * int(w_in.size)
    vmem_limit = int(min(48 << 20, max(live_bytes + (4 << 20), 16 << 20)))

    out = pl.pallas_call(
        kernel,
        out_shape=jax.ShapeDtypeStruct((num_rows, lane_d), out_dtype),
        grid_spec=pltpu.PrefetchScalarGridSpec(
            num_scalar_prefetch=0,
            grid=grid,
            in_specs=[
                pl.BlockSpec((tn, k_fold), lambda i: (i, 0)),   # x rows
                pl.BlockSpec(w_block, lambda i: (0, 0)),        # (tiny) weight
            ],
            out_specs=pl.BlockSpec((tn, lane_d), lambda i: (i, 0)),
        ),
        compiler_params=pltpu.CompilerParams(
            dimension_semantics=("parallel",),
            vmem_limit_bytes=vmem_limit,
        ),
        cost_estimate=pl.CostEstimate(
            flops=2 * num_rows * k_fold * lane_d,
            transcendentals=num_rows * lane_d,
            bytes_accessed=4 * (num_rows * k_fold + int(w_in.size))
            + num_rows * lane_d * out_itemsize,
        ),
    )(x2, w_in)

    # Row-major-compatible reshape back to (N, d): free in XLA.
    y = out.reshape(total, d)
    if total != n:
        y = y[:n]
    return y


def make_temporal_encoding_weight(out_channels: int) -> jax.Array:
    """Deterministic buffer, identical to the PyTorch __init__."""
    sqrt = math.sqrt(out_channels)
    exponents = jnp.linspace(0.0, sqrt, out_channels, dtype=jnp.float32)
    weight = 1.0 / (sqrt ** exponents)
    return weight.reshape(1, -1)


if __name__ == "__main__":
    out_channels = 32            # d
    key = jax.random.PRNGKey(0)
    # Small input: 2 x 128 timestamps -> flattened N = 256
    x = jax.random.uniform(key, (2, 128), dtype=jnp.float32) * 10.0

    weight = make_temporal_encoding_weight(out_channels)

    y = temporal_encoding(x, weight)
    y = jax.block_until_ready(y)

    # Reference check in plain JAX (same math as the PyTorch forward).
    y_ref = jnp.cos(x.reshape(-1, 1) @ weight)
    assert y.shape == (x.size, out_channels), y.shape
    assert jnp.allclose(y, y_ref, atol=1e-5, rtol=1e-5), "mismatch vs reference"

    print("KERNEL_OK")
</pallas_src>

<mosaic_0001>
module attributes {stable_mosaic.version = 11 : i64} {
  func.func @_fold_kernel(%arg0: i32, %arg1: memref<64x4xf32, #tpu.memory_space<vmem>>, %arg2: memref<4x128xf32, #tpu.memory_space<vmem>>, %arg3: memref<64x128xf32, #tpu.memory_space<vmem>>) attributes {dimension_semantics = [#tpu.dimension_semantics<parallel>], iteration_bounds = array<i64: 1>, scalar_prefetch = 0 : i64, scratch_operands = 0 : i64, tpu.core_type = #tpu.core_type<tc>, window_params = [{transform_indices = @transform_0, window_bounds = array<i64: 64, 4>}, {pipeline_mode = #tpu.pipeline_mode<synchronous>, transform_indices = @transform_1, window_bounds = array<i64: 4, 128>}, {transform_indices = @transform_2, window_bounds = array<i64: 64, 128>}]} {
    %c0 = arith.constant 0 : index
    %c0_0 = arith.constant 0 : index
    %0 = vector.load %arg1[%c0, %c0_0] : memref<64x4xf32, #tpu.memory_space<vmem>>, vector<64x4xf32>
    %c0_1 = arith.constant 0 : index
    %c0_2 = arith.constant 0 : index
    %1 = vector.load %arg2[%c0_1, %c0_2] : memref<4x128xf32, #tpu.memory_space<vmem>>, vector<4x128xf32>
    %cst = arith.constant dense<0.000000e+00> : vector<64x128xf32>
    %2 = tpu.matmul %0, %1, %cst {dimension_numbers = #tpu.dot_dimension_numbers<[1], [0], [0], [1], [0, 0, 1, 1], [], []>} : vector<64x4xf32>, vector<4x128xf32>, vector<64x128xf32> -> vector<64x128xf32>
    %3 = math.cos %2 : vector<64x128xf32>
    %c0_3 = arith.constant 0 : index
    %c0_4 = arith.constant 0 : index
    %4 = vector.load %arg3[%c0_3, %c0_4] : memref<64x128xf32, #tpu.memory_space<vmem>>, vector<64x128xf32>
    tpu.vector_store %arg3[%c0_3, %c0_4], %3 {strides = array<i32>} : memref<64x128xf32, #tpu.memory_space<vmem>>, vector<64x128xf32>,
    return
  }
  func.func @transform_0(%arg0: i32) -> (i32, i32) {
    %c0_i32 = arith.constant 0 : i32
    %c0_i32_0 = arith.constant 0 : i32
    return %arg0, %c0_i32 : i32, i32
  }
  func.func @transform_1(%arg0: i32) -> (i32, i32) {
    %c0_i32 = arith.constant 0 : i32
    %c0_i32_0 = arith.constant 0 : i32
    %c0_i32_1 = arith.constant 0 : i32
    return %c0_i32, %c0_i32_0 : i32, i32
  }
  func.func @transform_2(%arg0: i32) -> (i32, i32) {
    %c0_i32 = arith.constant 0 : i32
    %c0_i32_0 = arith.constant 0 : i32
    return %arg0, %c0_i32 : i32, i32
  }
}

</mosaic_0001>

<bundles_post_ra>
// kernel: tpu_custom_call.1
= control target key start
LH: loop header
LB: loop body
LE: loop exit
PB: predicated region body
PF: predicated region fallthrough
CT: control target
= control target key end

     0   :  { %vm46_vm0 = vcmask 1043456   ;;  %vm21_vm1 = vcmask 31744   ;;  %s1798_s0 = inlined_call_operand.vmem [shape: f32[64,4], index: 0, kind: input, shape index: {}]   ;;  %s1799_s1 = inlined_call_operand.vmem [shape: f32[4,128], index: 1, kind: input, shape index: {}]   ;;  %s1800_s2 = inlined_call_operand.hbm [shape: f32[64,128], index: 2, kind: output, shape index: {}]  }
   0x1   :  { %v20_v0 = vld [vmem:[%s1799_s1] sm:$0xf]  ;;  %v13_v3 = vld [vmem:[%s1798_s0 + $0x8] sm:$0xff]  ;;  %v14_v5 = vld [vmem:[%s1798_s0 + $0x10] sm:$0xff] }
   0x2   :  { %v12_v1 = vld [vmem:[%s1798_s0] sm:$0xff]  ;;  %1053 = vmatprep.subr.msk.mxu0 %vm46_vm0, %v20_v0  ;;  %1067 = vmatprep.subr.msk.mxu1 %vm46_vm0, %v20_v0  ;;  %v17_v4 = vld [vmem:[%s1798_s0 + $0x28] sm:$0xff]  ;;  %v18_v6 = vld [vmem:[%s1798_s0 + $0x30] sm:$0xff] }
   0x3   :  { %v16_v2 = vld [vmem:[%s1798_s0 + $0x20] sm:$0xff]  ;;  %1054 = vmatpush3.msk.msra.mxu0 %vm46_vm0, %v20_v0  ;;  %1068 = vmatpush3.msk.msra.mxu1 %vm46_vm0, %v20_v0 }
   0x4   :  { %1055 = vmatprep.mubr.msk.f32.mxu0 %vm21_vm1, %v12_v1  ;;  %1061 = vmatprep.mubr.msk.f32.mxu1 %vm21_vm1, %v16_v2 }
   0x5   :  { %7 = vsyncpa [#allocation3], 0  ;;  %1056 = vmatmul.mubr.msk.f32.vlgmr.msra.gmra.mrb[0].mxu0 %vm21_vm1, %v13_v3  ;;  %1062 = vmatmul.mubr.msk.f32.vlgmr.msra.gmra.mrb[0].mxu1 %vm21_vm1, %v17_v4  ;;  %v15_v7 = vld [vmem:[%s1798_s0 + $0x18] sm:$0xff]  ;;  %v1166_v44 = vmov 683565275  }
   0x6   :  { %1058 = vmatprep.mubr.msk.f32.mxu0 %vm21_vm1, %v14_v5  ;;  %1064 = vmatprep.mubr.msk.f32.mxu1 %vm21_vm1, %v18_v6  ;;  %v19_v8 = vld [vmem:[%s1798_s0 + $0x38] sm:$0xff]  ;;  %v1167_v48 = vmov 2475754826   ;;  %v1168_v50 = vmov 2131351028   ;;  %s1172_s0 = smov [#allocation2]  }
   0x7   :  { %v1169_v52 = vmov 2102212464   ;;  %v1170_v54 = vmov 920167782   ;;  %v1171_v61 = vmov 1326507024  }
   0x8   :  { %s992_s26 = sshll.u32 %s1172_s0, 4  ;;  %s993_s26 = int_to_ptr.vmem [resolvable:$true] %s992_s26 }
   0x9   :  { %1059 = vmatmul.mubr.msk.f32.gmra.mrb[2].mxu0 %vm21_vm1, %v15_v7  ;;  %1065 = vmatmul.mubr.msk.f32.gmra.mrb[2].mxu1 %vm21_vm1, %v19_v8  ;;  %s1142_s27 = scalar_lea.vmem %s993_s26, 1024  ;;  %p1147_p1 = scmp.lt.s32.totalorder %s993_s26, %s993_s26 }
   0xa   :  { %p1143_p0 = scmp.ne.s32.totalorder %s993_s26, %s1142_s27  ;;  %p1148_p2 = scmp.lt.s32.totalorder %s1142_s27, %s1142_s27 }
   0xc   :  { %p1149_p3 = por %p1148_p2, %p1147_p1 }
   0xe   :  { %p1150_p4 = pnand %p1149_p3, %p1143_p0 }
  0xd8   :  { %v1225_v9 = vpop.f32.mrb[0].mxu0  ;;  %v1227_v10 = vpop.f32.mrb[0].mxu1 }
  0xd9   :  { %v258_v11 = vand.u32 2147483647, %v1225_v9  ;;  %v261_v12 = vand.u32 2139095040, %v1225_v9  ;;  %v1231_v13 = vpop.f32.mrb[1].mxu0  ;;  %v1233_v14 = vpop.f32.mrb[1].mxu1  ;;  %v673_v16 = vand.u32 2139095040, %v1227_v10 }
  0xda   :  { %v670_v15 = vand.u32 2147483647, %v1227_v10  ;;  %v158_v21 = vand.u32 2139095040, %v1231_v13  ;;  %v155_v32 = vand.u32 2147483647, %v1231_v13  ;;  %vm260_vm15 = vcmp.lt.s32.totalorder %v1225_v9, 0 }
  0xdb   :  { %v262_v17 = vshrl.u32 %v261_v12, 23  ;;  %v265_v18 = vand.u32 8388607, %v258_v11  ;;  %v674_v19 = vshrl.u32 %v673_v16, 23 }
  0xdc   :  { %v677_v20 = vand.u32 8388607, %v670_v15  ;;  %v1242_v23 = vpop.f32.mrb[2].mxu0  ;;  %v1244_v24 = vpop.f32.mrb[2].mxu1  ;;  %v159_v26 = vshrl.u32 %v158_v21, 23 }
  0xdd   :  { %v1016_v22 = vadd.s32 4294967169, %v262_v17  ;;  %v1032_v25 = vadd.s32 4294967169, %v674_v19  ;;  %v1246_v27 = vpop.f32.mrb[3].mxu0  ;;  %v266_v28 = vor.u32 8388608, %v265_v18  ;;  %v1249_v34 = vpop.f32.mrb[3].mxu1 }
  0xde   :  { %v678_v30 = vor.u32 8388608, %v677_v20  ;;  %v1012_v33 = vadd.s32 4294967169, %v159_v26  ;;  %v1257_v41 = vand.u32 8388607, %v155_v32 }
  0xdf   :  { %v268_v29 = vadd.s32 1, %v1016_v22  ;;  %v680_v31 = vadd.s32 1, %v1032_v25  ;;  %v1251_v39 = vshll.u32 %v266_v28, 8 }
  0xe0   :  { %v1253_v40 = vshll.u32 %v678_v30, 8  ;;  %v1259_v42 = vadd.s32 1, %v1012_v33 }
  0xe1   :  { %vm269_vm2 = vcmp.gt.s32.totalorder %v268_v29, 0  ;;  %vm681_vm3 = vcmp.gt.s32.totalorder %v680_v31, 0 }
  0xe2   :  { %v270_v35 = vsel %vm269_vm2, %v268_v29, 0  ;;  %v682_v38 = vsel %vm681_vm3, %v680_v31, 0  ;;  %vm166_vm8 = vcmp.gt.s32.totalorder %v1259_v42, 0 }
  0xe3   :  { %v271_v36 = vshrl.u32 %v270_v35, 5  ;;  %v272_v37 = vand.u32 31, %v270_v35  ;;  %v1262_v46 = vshrl.u32 %v682_v38, 5  ;;  %v684_v47 = vand.u32 31, %v682_v38 }
  0xe5   :  { %v273_v43 = vsub.s32 32, %v272_v37  ;;  %v275_v45 = vshll.u32 %v1166_v44, %v272_v37  ;;  %v278_v49 = vshll.u32 %v1167_v48, %v272_v37  ;;  %v281_v51 = vshll.u32 %v1168_v50, %v272_v37 }
  0xe6   :  { %v284_v53 = vshll.u32 %v1169_v52, %v272_v37  ;;  %v287_v55 = vshll.u32 %v1170_v54, %v272_v37  ;;  %vm290_vm4 = vcmp.lt.s32.totalorder %v271_v36, 1  ;;  %vm291_vm5 = vcmp.lt.s32.totalorder %v271_v36, 2 }
  0xe7   :  { %v276_v56 = vshrl.u32 %v1167_v48, %v273_v43  ;;  %v279_v57 = vshrl.u32 %v1168_v50, %v273_v43  ;;  %v282_v58 = vshrl.u32 %v1169_v52, %v273_v43  ;;  %v274_v59 = vshrl.u32 %v1166_v44, %v273_v43 }
  0xe8   :  { %v285_v60 = vshrl.u32 %v1170_v54, %v273_v43  ;;  %v288_v62 = vshrl.u32 %v1171_v61, %v273_v43  ;;  %v685_v2 = vsub.s32 32, %v684_v47  ;;  %vm292_vm6 = vcmp.lt.s32.totalorder %v271_v36, 3 }
  0xe9   :  { %v277_v63 = vor.u32 %v276_v56, %v275_v45  ;;  %v280_v0 = vor.u32 %v279_v57, %v278_v49  ;;  %v283_v1 = vor.u32 %v282_v58, %v281_v51  ;;  %vm293_vm7 = vcmp.lt.s32.totalorder %v271_v36, 4 }
  0xea   :  { %v286_v3 = vor.u32 %v285_v60, %v284_v53  ;;  %v289_v4 = vor.u32 %v288_v62, %v287_v55  ;;  %v687_v18 = vshll.u32 %v1166_v44, %v684_v47  ;;  %v688_v21 = vshrl.u32 %v1167_v48, %v685_v2 }
  0xeb   :  { %v294_v5 = vsel %vm290_vm4, %v274_v59, %v277_v63  ;;  %v295_v6 = vsel %vm293_vm7, %v283_v1, 2102212464  ;;  %v298_v7 = vsel %vm290_vm4, %v277_v63, %v280_v0  ;;  %v302_v8 = vsel %vm290_vm4, %v280_v0, %v283_v1 }
  0xec   :  { %v296_v12 = vsel %vm292_vm6, %v280_v0, %v295_v6  ;;  %v299_v16 = vsel %vm293_vm7, %v286_v3, 920167782  ;;  %v303_v17 = vsel %vm293_vm7, %v289_v4, 1326507024  ;;  %v690_v22 = vshll.u32 %v1167_v48, %v684_v47 }
  0xed   :  { %v300_v19 = vsel %vm292_vm6, %v283_v1, %v299_v16  ;;  %v304_v20 = vsel %vm292_vm6, %v286_v3, %v303_v17  ;;  %v297_v25 = vsel %vm291_vm5, %v294_v5, %v296_v12  ;;  %v691_v29 = vshrl.u32 %v1168_v50, %v685_v2 }
  0xee   :  { %v301_v26 = vsel %vm291_vm5, %v298_v7, %v300_v19  ;;  %v305_v28 = vsel %vm291_vm5, %v302_v8, %v304_v20  ;;  %v689_v37 = vor.u32 %v688_v21, %v687_v18  ;;  %v693_v43 = vshll.u32 %v1168_v50, %v684_v47 }
  0xef   :  { %v1286_v30 = vmul.u32.u64.low %v1251_v39, %v305_v28  ;;  %v1287_v31 = vmul.u32.u64.high %v1251_v39, %v305_v28, %v1286_v30  ;;  %v1290_v33 = vmul.u32.u64.low %v1251_v39, %v301_v26  ;;  %v1291_v35 = vmul.u32.u64.high %v1251_v39, %v301_v26, %v1290_v33 }
  0xf0   :  { %v692_v38 = vor.u32 %v691_v29, %v690_v22  ;;  %v694_v45 = vshrl.u32 %v1169_v52, %v685_v2  ;;  %v686_v36 = vshrl.u32 %v1166_v44, %v685_v2  ;;  %v696_v49 = vshll.u32 %v1169_v52, %v684_v47 }
  0xf1   :  { %v697_v51 = vshrl.u32 %v1170_v54, %v685_v2  ;;  %v700_v53 = vshrl.u32 %v1171_v61, %v685_v2  ;;  %v313_v55 = vmul.u32 %v1251_v39, %v297_v25  ;;  %v699_v57 = vshll.u32 %v1170_v54, %v684_v47 }
  0xf2   :  { %v695_v56 = vor.u32 %v694_v45, %v693_v43  ;;  %vm702_vm9 = vcmp.lt.s32.totalorder %v1262_v46, 1  ;;  %vm315_vm10 = vc.u32 %v1287_v31, %v1290_v33  ;;  %v316_v58 = vadd.s32 1, %v1291_v35 }
  0xf3   :  { %v698_v59 = vor.u32 %v697_v51, %v696_v49  ;;  %vm703_vm11 = vcmp.lt.s32.totalorder %v1262_v46, 2  ;;  %v701_v60 = vor.u32 %v700_v53, %v699_v57  ;;  %vm704_vm12 = vcmp.lt.s32.totalorder %v1262_v46, 3 }
  0xf4   :  { %vm705_vm13 = vcmp.lt.s32.totalorder %v1262_v46, 4  ;;  %v710_v62 = vsel %vm702_vm9, %v689_v37, %v692_v38  ;;  %v317_v39 = vsel %vm315_vm10, %v316_v58, %v1291_v35  ;;  %v714_v0 = vsel %vm702_vm9, %v692_v38, %v695_v56 }
  0xf5   :  { %v707_v63 = vsel %vm705_vm13, %v695_v56, 2102212464  ;;  %v711_v47 = vsel %vm705_vm13, %v698_v59, 920167782  ;;  %v318_v1 = vadd.s32 %v317_v39, %v313_v55  ;;  %v706_v2 = vsel %vm702_vm9, %v686_v36, %v689_v37 }
  0xf6   :  { %v712_v3 = vsel %vm704_vm12, %v695_v56, %v711_v47  ;;  %v715_v4 = vsel %vm705_vm13, %v701_v60, 1326507024  ;;  %v708_v5 = vsel %vm704_vm12, %v692_v38, %v707_v63  ;;  %v167_v8 = vsel %vm166_vm8, %v1259_v42, 0 }
  0xf7   :  { %v713_v6 = vsel %vm703_vm11, %v710_v62, %v712_v3  ;;  %v716_v7 = vsel %vm704_vm12, %v698_v59, %v715_v4  ;;  %v319_v12 = vadd.s32 536870912, %v318_v1  ;;  %v709_v22 = vsel %vm703_vm11, %v706_v2, %v708_v5 }
  0xf8   :  { %v717_v16 = vsel %vm703_vm11, %v714_v0, %v716_v7  ;;  %v1318_v17 = vmul.u32.u64.low %v1253_v40, %v713_v6  ;;  %v1319_v18 = vmul.u32.u64.high %v1253_v40, %v713_v6, %v1318_v17  ;;  %v169_v25 = vand.u32 31, %v167_v8 }
  0xf9   :  { %v1323_v19 = vmul.u32.u64.low %v1253_v40, %v717_v16  ;;  %v1324_v20 = vmul.u32.u64.high %v1253_v40, %v717_v16, %v1323_v19  ;;  %v1326_v21 = vshrl.u32 %v319_v12, 30  ;;  %v570_v42 = vand.u32 2139095040, %v1233_v14 }
  0xfa   :  { %v567_v26 = vand.u32 2147483647, %v1233_v14  ;;  %v728_v29 = vadd.s32 1, %v1319_v18  ;;  %v163_v30 = vor.u32 8388608, %v1257_v41  ;;  %v170_v35 = vsub.s32 32, %v169_v25 }
  0xfb   :  { %v321_v28 = vshll.u32 %v1326_v21, 30  ;;  %v725_v37 = vmul.u32 %v1253_v40, %v709_v22  ;;  %vm727_vm14 = vc.u32 %v1324_v20, %v1318_v17  ;;  %v571_v43 = vshrl.u32 %v570_v42, 23 }
  0xfc   :  { %v729_v46 = vsel %vm727_vm14, %v728_v29, %v1319_v18  ;;  %v173_v36 = vshrl.u32 %v1167_v48, %v170_v35  ;;  %v176_v49 = vshrl.u32 %v1168_v50, %v170_v35  ;;  %v1345_v51 = vand.u32 8388607, %v567_v26 }
  0xfd   :  { %v1338_v38 = vsub.s32 %v318_v1, %v321_v28  ;;  %v730_v45 = vadd.s32 %v729_v46, %v725_v37  ;;  %v172_v40 = vshll.u32 %v1166_v44, %v169_v25  ;;  %v179_v53 = vshrl.u32 %v1169_v52, %v170_v35 }
  0xfe   :  { %v1350_v55 = vshll.u32 %v163_v30, 8  ;;  %v314_v56 = vadd.s32 %v1290_v33, %v1287_v31  ;;  %v168_v58 = vshrl.u32 %v167_v8, 5  ;;  %v175_v59 = vshll.u32 %v1167_v48, %v169_v25 }
  0xff   :  { %v324_v41 = vsub.s32 0, %v1338_v38  ;;  %v731_v57 = vadd.s32 536870912, %v730_v45  ;;  %v174_v62 = vor.u32 %v173_v36, %v172_v40  ;;  %v178_v39 = vshll.u32 %v1168_v50, %v169_v25 }
 0x100   :  { %v1028_v63 = vadd.s32 4294967169, %v571_v43  ;;  %v177_v0 = vor.u32 %v176_v49, %v175_v59  ;;  %v181_v1 = vshll.u32 %v1169_v52, %v169_v25  ;;  %v182_v2 = vshrl.u32 %v1170_v54, %v170_v35 }
 0x101   :  { %v1017_v60 = vmin.u32 %v324_v41, %v1338_v38  ;;  %v1358_v47 = vshrl.u32 %v731_v57, 30  ;;  %v180_v4 = vor.u32 %v179_v53, %v178_v39  ;;  %v184_v31 = vshll.u32 %v1170_v54, %v169_v25 }
 0x102   :  { %v185_v33 = vshrl.u32 %v1171_v61, %v170_v35  ;;  %v183_v6 = vor.u32 %v182_v2, %v181_v1  ;;  %vm187_vm0 = vcmp.lt.s32.totalorder %v168_v58, 1  ;;  %vm188_vm1 = vcmp.lt.s32.totalorder %v168_v58, 2 }
 0x103   :  { %v326_v3 = vclz %v1017_v60  ;;  %v733_v5 = vshll.u32 %v1358_v47, 30  ;;  %v344_v8 = vsub.s32 4, %v1326_v21  ;;  %vm190_vm2 = vcmp.lt.s32.totalorder %v168_v58, 4 }
 0x104   :  { %v186_v12 = vor.u32 %v185_v33, %v184_v31  ;;  %vm189_vm3 = vcmp.lt.s32.totalorder %v168_v58, 3  ;;  %v195_v18 = vsel %vm187_vm0, %v174_v62, %v177_v0  ;;  %v196_v19 = vsel %vm190_vm2, %v183_v6, 920167782 }
 0x105   :  { %v1018_v7 = vadd.s32 4294967294, %v326_v3  ;;  %v1366_v16 = vsub.s32 %v730_v45, %v733_v5  ;;  %v192_v22 = vsel %vm190_vm2, %v180_v4, 2102212464  ;;  %v197_v25 = vsel %vm189_vm3, %v180_v4, %v196_v19 }
 0x106   :  { %v200_v42 = vsel %vm190_vm2, %v186_v12, 1326507024  ;;  %v171_v30 = vshrl.u32 %v1166_v44, %v170_v35  ;;  %v199_v37 = vsel %vm187_vm0, %v177_v0, %v180_v4  ;;  %v345_v45 = vsel %vm260_vm15, %v344_v8, %v1326_v21 }
 0x107   :  { %vm1019_vm4 = vcmp.lt.s32.totalorder %v1018_v7, 0  ;;  %v736_v29 = vsub.s32 0, %v1366_v16  ;;  %v201_v36 = vsel %vm189_vm3, %v183_v6, %v200_v42  ;;  %v193_v40 = vsel %vm189_vm3, %v177_v0, %v192_v22 }
 0x108   :  { %v329_v28 = vsel %vm1019_vm4, 0, %v1018_v7  ;;  %v191_v41 = vsel %vm187_vm0, %v171_v30, %v174_v62  ;;  %v198_v53 = vsel %vm188_vm1, %v195_v18, %v197_v25  ;;  %v202_v60 = vsel %vm188_vm1, %v199_v37, %v201_v36 }
 0x109   :  { %v330_v46 = vsub.s32 32, %v329_v28  ;;  %v334_v43 = vsub.s32 4294967266, %v329_v28  ;;  %v1033_v49 = vmin.u32 %v736_v29, %v1366_v16  ;;  %v331_v35 = vshll.u32 %v1338_v38, %v329_v28 }
 0x10a   :  { %vm672_vm5 = vcmp.lt.s32.totalorder %v1227_v10, 0  ;;  %v1385_v21 = vmul.u32.u64.low %v1350_v55, %v202_v60  ;;  %v1386_v1 = vmul.u32.u64.high %v1350_v55, %v202_v60, %v1385_v21  ;;  %v577_v2 = vadd.s32 1, %v1028_v63 }
 0x10b   :  { %v332_v57 = vshrl.u32 %v314_v56, %v330_v46  ;;  %v335_v59 = vadd.s32 127, %v334_v43  ;;  %v738_v39 = vclz %v1033_v49  ;;  %vm1395_vm6 = vcmp.le.f32.partialorder %v258_v11, 0.7853982 }
 0x10c   :  { %v1389_v0 = vmul.u32.u64.low %v1350_v55, %v198_v53  ;;  %v1390_v4 = vmul.u32.u64.high %v1350_v55, %v198_v53, %v1389_v0  ;;  %v575_v31 = vor.u32 8388608, %v1345_v51  ;;  %vm578_vm7 = vcmp.gt.s32.totalorder %v577_v2, 0 }
 0x10d   :  { %v333_v3 = vor.u32 %v332_v57, %v331_v35  ;;  %v336_v62 = vshll.u32 %v335_v59, 23  ;;  %v1034_v56 = vadd.s32 4294967294, %v738_v39  ;;  %v347_v63 = vsel %vm1395_vm6, 0, %v345_v45 }
 0x10e   :  { %v194_v5 = vsel %vm188_vm1, %v191_v41, %v193_v40  ;;  %v579_v6 = vsel %vm578_vm7, %v577_v2, 0  ;;  %v756_v8 = vsub.s32 4, %v1358_v47  ;;  %vm212_vm9 = vc.u32 %v1386_v1, %v1389_v0 }
 0x10f   :  { %v337_v33 = vor.u32 4788187, %v336_v62  ;;  %v340_v7 = vcvt.s32.f32 %v333_v3  ;;  %vm1035_vm8 = vcmp.lt.s32.totalorder %v1034_v56, 0  ;;  %v213_v18 = vadd.s32 1, %v1390_v4 }
 0x110   :  { %v741_v12 = vsel %vm1035_vm8, 0, %v1034_v56  ;;  %v581_v19 = vand.u32 31, %v579_v6  ;;  %v726_v22 = vadd.s32 %v1318_v17, %v1324_v20  ;;  %v210_v58 = vmul.u32 %v1350_v55, %v194_v5 }
 0x111   :  { %v338_v11 = vand.u32 2147483647, %v337_v33  ;;  %v742_v25 = vsub.s32 32, %v741_v12  ;;  %v746_v42 = vsub.s32 4294967266, %v741_v12  ;;  %v1410_v29 = vand.u32 3, %v347_v63 }
 0x112   :  { %v214_v30 = vsel %vm212_vm9, %v213_v18, %v1390_v4  ;;  %v582_v37 = vsub.s32 32, %v581_v19  ;;  %v743_v46 = vshll.u32 %v1366_v16, %v741_v12  ;;  %v1417_v17 = vsel %vm672_vm5, %v756_v8, %v1358_v47 }
 0x113   :  { %v341_v28 = vmul.f32 %v340_v7, %v338_v11  ;;  %v744_v43 = vshrl.u32 %v726_v22, %v742_v25  ;;  %v747_v45 = vadd.s32 127, %v746_v42  ;;  %v215_v36 = vadd.s32 %v214_v30, %v210_v58 }
 0x114   :  { %v1419_v20 = vshrl.u32 %v579_v6, 5  ;;  %v584_v55 = vshll.u32 %v1166_v44, %v581_v19  ;;  %v587_v35 = vshll.u32 %v1167_v48, %v581_v19  ;;  %v585_v57 = vshrl.u32 %v1167_v48, %v582_v37 }
 0x115   :  { %v342_v49 = vxor.u32 2147483648, %v341_v28  ;;  %v745_v41 = vor.u32 %v744_v43, %v743_v46  ;;  %v748_v40 = vshll.u32 %v747_v45, 23  ;;  %v216_v53 = vadd.s32 536870912, %v215_v36 }
 0x116   :  { %v588_v59 = vshrl.u32 %v1168_v50, %v582_v37  ;;  %v591_v60 = vshrl.u32 %v1169_v52, %v582_v37  ;;  %v590_v2 = vshll.u32 %v1168_v50, %v581_v19  ;;  %v593_v62 = vshll.u32 %v1169_v52, %v581_v19 }
 0x117   :  { %v343_v16 = vsel %vm260_vm15, %v342_v49, %v341_v28  ;;  %v749_v39 = vor.u32 4788187, %v748_v40  ;;  %v1431_v21 = vshrl.u32 %v216_v53, 30  ;;  %v752_v3 = vcvt.s32.f32 %v745_v41 }
 0x118   :  { %v346_v47 = vsel %vm1395_vm6, %v1225_v9, %v343_v16  ;;  %v594_v4 = vshrl.u32 %v1170_v54, %v582_v37  ;;  %v592_v63 = vor.u32 %v591_v60, %v590_v2  ;;  %v586_v5 = vor.u32 %v585_v57, %v584_v55 }
 0x119   :  { %1110 = vcosq.f32 %v346_v47  ;;  %v750_v56 = vand.u32 2147483647, %v749_v39  ;;  %v218_v33 = vshll.u32 %v1431_v21, 30  ;;  %v589_v6 = vor.u32 %v588_v59, %v587_v35 }
 0x11a   :  { %1112 = vsinq.f32 %v346_v47  ;;  %v595_v38 = vor.u32 %v594_v4, %v593_v62  ;;  %v597_v7 = vshrl.u32 %v1171_v61, %v582_v37  ;;  %vm1440_vm10 = vcmp.le.f32.partialorder %v670_v15, 0.7853982 }
 0x11b   :  { %v753_v11 = vmul.f32 %v752_v3, %v750_v56  ;;  %v1444_v12 = vsub.s32 %v215_v36, %v218_v33  ;;  %v596_v18 = vshll.u32 %v1170_v54, %v581_v19  ;;  %vm356_vm11 = vcmp.eq.s32.totalorder %v1410_v29, 2 }
 0x11c   :  { %v759_v22 = vsel %vm1440_vm10, 0, %v1417_v17  ;;  %v583_v25 = vshrl.u32 %v1166_v44, %v582_v37  ;;  %vm599_vm12 = vcmp.lt.s32.totalorder %v1419_v20, 1  ;;  %vm602_vm13 = vcmp.lt.s32.totalorder %v1419_v20, 4 }
 0x11d   :  { %vm353_vm14 = vcmp.eq.s32.totalorder %v1410_v29, 0  ;;  %v754_v15 = vxor.u32 2147483648, %v753_v11  ;;  %v221_v42 = vsub.s32 0, %v1444_v12  ;;  %v598_v58 = vor.u32 %v597_v7, %v596_v18 }
 0x11e   :  { %v604_v19 = vsel %vm602_vm13, %v592_v63, 2102212464  ;;  %vm352_vm15 = vcmp.lt.s32.totalorder %v1410_v29, 2  ;;  %vm600_vm0 = vcmp.lt.s32.totalorder %v1419_v20, 2  ;;  %v607_v28 = vsel %vm599_vm12, %v586_v5, %v589_v6 }
 0x11f   :  { %v608_v30 = vsel %vm602_vm13, %v595_v38, 920167782  ;;  %v615_v37 = vshll.u32 %v575_v31, 8  ;;  %vm350_vm1 = vweird.f32 %v1225_v9  ;;  %v755_v46 = vsel %vm672_vm5, %v754_v15, %v753_v11 }
 0x120   :  { %v1013_v43 = vmin.u32 %v221_v42, %v1444_v12  ;;  %vm601_vm2 = vcmp.lt.s32.totalorder %v1419_v20, 3  ;;  %v603_v45 = vsel %vm599_vm12, %v583_v25, %v586_v5  ;;  %v758_v36 = vsel %vm1440_vm10, %v1227_v10, %v755_v46 }
 0x121   :  { %v605_v49 = vsel %vm601_vm2, %v589_v6, %v604_v19  ;;  %v609_v17 = vsel %vm601_vm2, %v592_v63, %v608_v30  ;;  %v611_v51 = vsel %vm599_vm12, %v589_v6, %v592_v63  ;;  %1114 = vcosq.f32 %v758_v36 }
 0x122   :  { %v223_v31 = vclz %v1013_v43  ;;  %v610_v55 = vsel %vm600_vm0, %v607_v28, %v609_v17  ;;  %v612_v41 = vsel %vm602_vm13, %v598_v58, 1326507024  ;;  %1116 = vsinq.f32 %v758_v36 }
 0x123   :  { %v1111_v40 = vpop.eup %1110  ;;  %v613_v53 = vsel %vm601_vm2, %v595_v38, %v612_v41  ;;  %v1482_v35 = vmul.u32.u64.low %v615_v37, %v610_v55  ;;  %v1483_v16 = vmul.u32.u64.high %v615_v37, %v610_v55, %v1482_v35  ;;  %v763_v60 = vand.u32 3, %v759_v22 }
 0x124   :  { %v1113_v57 = vpop.eup %1112  ;;  %v357_v59 = vxor.u32 2147483648, %v1111_v40  ;;  %v1014_v47 = vadd.s32 4294967294, %v223_v31  ;;  %v614_v39 = vsel %vm600_vm0, %v611_v51, %v613_v53  ;;  %v464_v4 = vand.u32 2147483647, %v1242_v23 }
 0x125   :  { %v354_v2 = vxor.u32 2147483648, %v1113_v57  ;;  %v1488_v3 = vmul.u32.u64.low %v615_v37, %v614_v39  ;;  %v1489_v62 = vmul.u32.u64.high %v615_v37, %v614_v39, %v1488_v3  ;;  %v606_v33 = vsel %vm600_vm0, %v603_v45, %v605_v49 }
 0x126   :  { %v358_v56 = vsel %vm356_vm11, %v357_v59, %v1113_v57  ;;  %vm1015_vm3 = vcmp.lt.s32.totalorder %v1014_v47, 0  ;;  %v467_v63 = vand.u32 2139095040, %v1242_v23  ;;  %v211_v6 = vadd.s32 %v1389_v0, %v1386_v1 }
 0x127   :  { %v355_v5 = vsel %vm353_vm14, %v1111_v40, %v354_v2  ;;  %v226_v38 = vsel %vm1015_vm3, 0, %v1014_v47  ;;  %v625_v7 = vadd.s32 1, %v1483_v16  ;;  %v241_v22 = vsub.s32 4, %v1431_v21 }
 0x128   :  { %v359_v8 = vsel %vm352_vm15, %v355_v5, %v358_v56  ;;  %v227_v11 = vsub.s32 32, %v226_v38  ;;  %v231_v18 = vsub.s32 4294967266, %v226_v38  ;;  %vm762_vm4 = vweird.f32 %v1227_v10 }
 0x129   :  { %v360_v20 = vsel %vm350_vm1, nan, %v359_v8  ;;  %v622_v25 = vmul.u32 %v615_v37, %v606_v33  ;;  %vm624_vm5 = vc.u32 %v1489_v62, %v1482_v35  ;;  %v468_v1 = vshrl.u32 %v467_v63, 23 }
 0x12a   :  { %980 = vst [vmem:[#allocation2 + $0x8] sm:$0xff] %v360_v20  ;;  %v228_v0 = vshll.u32 %v1444_v12, %v226_v38  ;;  %v229_v15 = vshrl.u32 %v211_v6, %v227_v11  ;;  %v232_v29 = vadd.s32 127, %v231_v18  ;;  %v626_v42 = vsel %vm624_vm5, %v625_v7, %v1483_v16 }
 0x12b   :  { %vm1514_vm6 = vcmp.le.f32.partialorder %v155_v32, 0.7853982  ;;  %vm157_vm7 = vcmp.lt.s32.totalorder %v1231_v13, 0  ;;  %v627_v9 = vadd.s32 %v626_v42, %v622_v25  ;;  %v1024_v19 = vadd.s32 4294967169, %v468_v1  ;;  %v1115_v28 = vpop.eup %1114 }
 0x12c   :  { %vm764_vm8 = vcmp.lt.s32.totalorder %v763_v60, 2  ;;  %vm765_vm9 = vcmp.eq.s32.totalorder %v763_v60, 0  ;;  %v230_v30 = vor.u32 %v229_v15, %v228_v0  ;;  %v233_v37 = vshll.u32 %v232_v29, 23  ;;  %v1117_v12 = vpop.eup %1116 }
 0x12d   :  { %v769_v46 = vxor.u32 2147483648, %v1115_v28  ;;  %v628_v43 = vadd.s32 536870912, %v627_v9  ;;  %v471_v45 = vand.u32 8388607, %v464_v4  ;;  %v474_v36 = vadd.s32 1, %v1024_v19 }
 0x12e   :  { %v766_v32 = vxor.u32 2147483648, %v1117_v12  ;;  %vm768_vm10 = vcmp.eq.s32.totalorder %v763_v60, 2  ;;  %v234_v49 = vor.u32 4788187, %v233_v37  ;;  %v242_v17 = vsel %vm157_vm7, %v241_v22, %v1431_v21 }
 0x12f   :  { %v770_v51 = vsel %vm768_vm10, %v769_v46, %v1117_v12  ;;  %v1524_v31 = vshrl.u32 %v628_v43, 30  ;;  %vm475_vm11 = vcmp.gt.s32.totalorder %v474_v36, 0  ;;  %v879_v55 = vand.u32 2139095040, %v1244_v24 }
 0x130   :  { %v767_v41 = vsel %vm765_vm9, %v1115_v28, %v766_v32  ;;  %v235_v40 = vand.u32 2147483647, %v234_v49  ;;  %v237_v53 = vcvt.s32.f32 %v230_v30  ;;  %v476_v16 = vsel %vm475_vm11, %v474_v36, 0 }
 0x131   :  { %v771_v57 = vsel %vm764_vm8, %v767_v41, %v770_v51  ;;  %v244_v59 = vsel %vm1514_vm6, 0, %v242_v17  ;;  %v630_v47 = vshll.u32 %v1524_v31, 30  ;;  %v472_v39 = vor.u32 8388608, %v471_v45 }
 0x132   :  { %v772_v21 = vsel %vm762_vm4, nan, %v771_v57  ;;  %v238_v2 = vmul.f32 %v237_v53, %v235_v40  ;;  %v478_v3 = vand.u32 31, %v476_v16  ;;  %v477_v33 = vshrl.u32 %v476_v16, 5 }
 0x133   :  { %984 = vst [vmem:[#allocation2 + $0x28] sm:$0xff] %v772_v21  ;;  %v1534_v56 = vsub.s32 %v627_v9, %v630_v47  ;;  %v880_v63 = vshrl.u32 %v879_v55, 23  ;;  %v1536_v6 = vand.u32 3, %v244_v59  ;;  %v623_v60 = vadd.s32 %v1482_v35, %v1489_v62 }
 0x134   :  { %v239_v5 = vxor.u32 2147483648, %v238_v2  ;;  %v479_v38 = vsub.s32 32, %v478_v3  ;;  %v481_v8 = vshll.u32 %v1166_v44, %v478_v3  ;;  %v1542_v10 = vshll.u32 %v472_v39, 8 }
 0x135   :  { %v633_v7 = vsub.s32 0, %v1534_v56  ;;  %v876_v11 = vand.u32 2147483647, %v1244_v24  ;;  %v484_v20 = vshll.u32 %v1167_v48, %v478_v3  ;;  %vm496_vm12 = vcmp.lt.s32.totalorder %v477_v33, 1 }
 0x136   :  { %v240_v18 = vsel %vm157_vm7, %v239_v5, %v238_v2  ;;  %v482_v22 = vshrl.u32 %v1167_v48, %v479_v38  ;;  %v485_v25 = vshrl.u32 %v1168_v50, %v479_v38  ;;  %v1040_v1 = vadd.s32 4294967169, %v880_v63 }
 0x137   :  { %v243_v35 = vsel %vm1514_vm6, %v1231_v13, %v240_v18  ;;  %v1029_v62 = vmin.u32 %v633_v7, %v1534_v56  ;;  %v487_v29 = vshll.u32 %v1168_v50, %v478_v3  ;;  %v480_v9 = vshrl.u32 %v1166_v44, %v479_v38 }
 0x138   :  { %1118 = vcosq.f32 %v243_v35  ;;  %v483_v0 = vor.u32 %v482_v22, %v481_v8  ;;  %v486_v15 = vor.u32 %v485_v25, %v484_v20  ;;  %v488_v19 = vshrl.u32 %v1169_v52, %v479_v38 }
 0x139   :  { %1120 = vsinq.f32 %v243_v35  ;;  %v635_v42 = vclz %v1029_v62  ;;  %v490_v28 = vshll.u32 %v1169_v52, %v478_v3  ;;  %v491_v58 = vshrl.u32 %v1170_v54, %v479_v38 }
 0x13a   :  { %v493_v30 = vshll.u32 %v1170_v54, %v478_v3  ;;  %v494_v37 = vshrl.u32 %v1171_v61, %v479_v38  ;;  %v489_v46 = vor.u32 %v488_v19, %v487_v29  ;;  %vm498_vm13 = vcmp.lt.s32.totalorder %v477_v33, 3 }
 0x13b   :  { %v1030_v12 = vadd.s32 4294967294, %v635_v42  ;;  %vm499_vm14 = vcmp.lt.s32.totalorder %v477_v33, 4  ;;  %v492_v43 = vor.u32 %v491_v58, %v490_v28  ;;  %v500_v36 = vsel %vm496_vm12, %v480_v9, %v483_v0 }
 0x13c   :  { %v495_v45 = vor.u32 %v494_v37, %v493_v30  ;;  %v504_v32 = vsel %vm496_vm12, %v483_v0, %v486_v15  ;;  %v501_v49 = vsel %vm499_vm14, %v489_v46, 2102212464  ;;  %v508_v17 = vsel %vm496_vm12, %v486_v15, %v489_v46 }
 0x13d   :  { %vm1031_vm15 = vcmp.lt.s32.totalorder %v1030_v12, 0  ;;  %v886_v51 = vadd.s32 1, %v1040_v1  ;;  %vm249_vm0 = vcmp.lt.s32.totalorder %v1536_v6, 2  ;;  %v502_v41 = vsel %vm498_vm13, %v486_v15, %v501_v49 }
 0x13e   :  { %v638_v55 = vsel %vm1031_vm15, 0, %v1030_v12  ;;  %v505_v40 = vsel %vm499_vm14, %v492_v43, 920167782  ;;  %v509_v53 = vsel %vm499_vm14, %v495_v45, 1326507024  ;;  %vm247_vm1 = vweird.f32 %v1231_v13 }
 0x13f   :  { %v639_v16 = vsub.s32 32, %v638_v55  ;;  %v640_v57 = vshll.u32 %v1534_v56, %v638_v55  ;;  %v643_v59 = vsub.s32 4294967266, %v638_v55  ;;  %vm497_vm2 = vcmp.lt.s32.totalorder %v477_v33, 2 }
 0x140   :  { %v503_v47 = vsel %vm497_vm2, %v500_v36, %v502_v41  ;;  %v506_v39 = vsel %vm498_vm13, %v489_v46, %v505_v40  ;;  %v510_v21 = vsel %vm498_vm13, %v492_v43, %v509_v53  ;;  %vm887_vm3 = vcmp.gt.s32.totalorder %v886_v51, 0 }
 0x141   :  { %v641_v2 = vshrl.u32 %v623_v60, %v639_v16  ;;  %v644_v3 = vadd.s32 127, %v643_v59  ;;  %v507_v63 = vsel %vm497_vm2, %v504_v32, %v506_v39  ;;  %v511_v5 = vsel %vm497_vm2, %v508_v17, %v510_v21 }
 0x142   :  { %v1119_v38 = vpop.eup %1118  ;;  %v1571_v7 = vmul.u32.u64.low %v1542_v10, %v511_v5  ;;  %v1572_v8 = vmul.u32.u64.high %v1542_v10, %v511_v5, %v1571_v7  ;;  %v1575_v18 = vmul.u32.u64.low %v1542_v10, %v507_v63  ;;  %v1576_v56 = vmul.u32.u64.high %v1542_v10, %v507_v63, %v1575_v18 }
 0x143   :  { %v1121_v22 = vpop.eup %1120  ;;  %v254_v20 = vxor.u32 2147483648, %v1119_v38  ;;  %v642_v25 = vor.u32 %v641_v2, %v640_v57  ;;  %v645_v33 = vshll.u32 %v644_v3, 23  ;;  %v888_v35 = vsel %vm887_vm3, %v886_v51, 0 }
 0x144   :  { %vm250_vm4 = vcmp.eq.s32.totalorder %v1536_v6, 0  ;;  %v251_v60 = vxor.u32 2147483648, %v1121_v22  ;;  %vm253_vm5 = vcmp.eq.s32.totalorder %v1536_v6, 2  ;;  %v890_v62 = vand.u32 31, %v888_v35 }
 0x145   :  { %v255_v1 = vsel %vm253_vm5, %v254_v20, %v1121_v22  ;;  %vm1583_vm6 = vcmp.le.f32.partialorder %v567_v26, 0.7853982  ;;  %v646_v15 = vor.u32 4788187, %v645_v33  ;;  %v653_v29 = vsub.s32 4, %v1524_v31 }
 0x146   :  { %v883_v42 = vand.u32 8388607, %v876_v11  ;;  %v252_v9 = vsel %vm250_vm4, %v1119_v38, %v251_v60  ;;  %v519_v19 = vmul.u32 %v1542_v10, %v503_v47  ;;  %vm521_vm7 = vc.u32 %v1572_v8, %v1575_v18 }
 0x147   :  { %v522_v28 = vadd.s32 1, %v1576_v56  ;;  %v256_v26 = vsel %vm249_vm0, %v252_v9, %v255_v1  ;;  %v647_v58 = vand.u32 2147483647, %v646_v15  ;;  %v649_v30 = vcvt.s32.f32 %v642_v25 }
 0x148   :  { %v891_v37 = vsub.s32 32, %v890_v62  ;;  %v257_v12 = vsel %vm247_vm1, nan, %v256_v26  ;;  %v889_v43 = vshrl.u32 %v888_v35, 5  ;;  %v893_v45 = vshll.u32 %v1166_v44, %v890_v62 }
 0x149   :  { %v523_v46 = vsel %vm521_vm7, %v522_v28, %v1576_v56  ;;  %979 = vst [vmem:[#allocation2] sm:$0xff] %v257_v12  ;;  %v650_v10 = vmul.f32 %v649_v30, %v647_v58  ;;  %v896_v49 = vshll.u32 %v1167_v48, %v890_v62  ;;  %v902_v51 = vshll.u32 %v1169_v52, %v890_v62 }
 0x14a   :  { %v524_v36 = vadd.s32 %v523_v46, %v519_v19  ;;  %v894_v32 = vshrl.u32 %v1167_v48, %v891_v37  ;;  %v897_v6 = vshrl.u32 %v1168_v50, %v891_v37  ;;  %v900_v17 = vshrl.u32 %v1169_v52, %v891_v37 }
 0x14b   :  { %v903_v13 = vshrl.u32 %v1170_v54, %v891_v37  ;;  %vm569_vm8 = vcmp.lt.s32.totalorder %v1233_v14, 0  ;;  %v651_v55 = vxor.u32 2147483648, %v650_v10  ;;  %v899_v40 = vshll.u32 %v1168_v50, %v890_v62 }
 0x14c   :  { %v525_v41 = vadd.s32 536870912, %v524_v36  ;;  %v895_v53 = vor.u32 %v894_v32, %v893_v45  ;;  %v898_v16 = vor.u32 %v897_v6, %v896_v49  ;;  %v906_v59 = vshrl.u32 %v1171_v61, %v891_v37 }
 0x14d   :  { %v904_v57 = vor.u32 %v903_v13, %v902_v51  ;;  %v652_v47 = vsel %vm569_vm8, %v651_v55, %v650_v10  ;;  %v901_v21 = vor.u32 %v900_v17, %v899_v40  ;;  %v905_v2 = vshll.u32 %v1170_v54, %v890_v62 }
 0x14e   :  { %v1609_v39 = vshrl.u32 %v525_v41, 30  ;;  %v654_v3 = vsel %vm569_vm8, %v653_v29, %v1524_v31  ;;  %v655_v63 = vsel %vm1583_vm6, %v1233_v14, %v652_v47  ;;  %v884_v5 = vor.u32 8388608, %v883_v42 }
 0x14f   :  { %vm908_vm9 = vcmp.lt.s32.totalorder %v889_v43, 1  ;;  %1122 = vcosq.f32 %v655_v63  ;;  %v907_v7 = vor.u32 %v906_v59, %v905_v2  ;;  %vm911_vm10 = vcmp.lt.s32.totalorder %v889_v43, 4 }
 0x150   :  { %v527_v38 = vshll.u32 %v1609_v39, 30  ;;  %1124 = vsinq.f32 %v655_v63  ;;  %vm910_vm11 = vcmp.lt.s32.totalorder %v889_v43, 3  ;;  %v916_v56 = vsel %vm908_vm9, %v895_v53, %v898_v16 }
 0x151   :  { %v917_v22 = vsel %vm911_vm10, %v904_v57, 920167782  ;;  %v656_v20 = vsel %vm1583_vm6, 0, %v654_v3  ;;  %vm909_vm12 = vcmp.lt.s32.totalorder %v889_v43, 2  ;;  %v913_v33 = vsel %vm911_vm10, %v901_v21, 2102212464 }
 0x152   :  { %v528_v31 = vsub.s32 %v524_v36, %v527_v38  ;;  %v918_v25 = vsel %vm910_vm11, %v901_v21, %v917_v22  ;;  %v924_v60 = vshll.u32 %v884_v5, 8  ;;  %v892_v1 = vshrl.u32 %v1166_v44, %v891_v37 }
 0x153   :  { %v919_v35 = vsel %vm909_vm12, %v916_v56, %v918_v25  ;;  %v920_v15 = vsel %vm908_vm9, %v898_v16, %v901_v21  ;;  %v921_v29 = vsel %vm911_vm10, %v907_v7, 1326507024  ;;  %v660_v42 = vand.u32 3, %v656_v20 }
 0x154   :  { %v530_v62 = vsub.s32 0, %v528_v31  ;;  %v922_v9 = vsel %vm910_vm11, %v904_v57, %v921_v29  ;;  %v1625_v19 = vmul.u32.u64.low %v924_v60, %v919_v35  ;;  %v1626_v0 = vmul.u32.u64.high %v924_v60, %v919_v35, %v1625_v19 }
 0x155   :  { %v912_v26 = vsel %vm908_vm9, %v892_v1, %v895_v53  ;;  %v914_v58 = vsel %vm910_vm11, %v898_v16, %v913_v33  ;;  %v923_v30 = vsel %vm909_vm12, %v920_v15, %v922_v9  ;;  %v364_v12 = vand.u32 2139095040, %v1246_v27 }
 0x156   :  { %v1025_v28 = vmin.u32 %v530_v62, %v528_v31  ;;  %vm659_vm13 = vweird.f32 %v1233_v14  ;;  %v1634_v46 = vmul.u32.u64.low %v924_v60, %v923_v30  ;;  %v1635_v45 = vmul.u32.u64.high %v924_v60, %v923_v30, %v1634_v46 }
 0x157   :  { %vm661_vm14 = vcmp.lt.s32.totalorder %v660_v42, 2  ;;  %v915_v10 = vsel %vm909_vm12, %v912_v26, %v914_v58  ;;  %v934_v36 = vadd.s32 1, %v1626_v0  ;;  %v365_v32 = vshrl.u32 %v364_v12, 23 }
 0x158   :  { %v532_v37 = vclz %v1025_v28  ;;  %vm662_vm15 = vcmp.eq.s32.totalorder %v660_v42, 0  ;;  %vm665_vm0 = vcmp.eq.s32.totalorder %v660_v42, 2  ;;  %v361_v17 = vand.u32 2147483647, %v1246_v27 }
 0x159   :  { %v1123_v49 = vpop.eup %1122  ;;  %v520_v55 = vadd.s32 %v1575_v18, %v1572_v8  ;;  %v550_v41 = vsub.s32 4, %v1609_v39  ;;  %v1020_v40 = vadd.s32 4294967169, %v365_v32  ;;  %v931_v43 = vmul.u32 %v924_v60, %v915_v10 }
 0x15a   :  { %v1026_v6 = vadd.s32 4294967294, %v532_v37  ;;  %v1125_v51 = vpop.eup %1124  ;;  %v666_v13 = vxor.u32 2147483648, %v1123_v49  ;;  %vm933_vm2 = vc.u32 %v1635_v45, %v1625_v19  ;;  %v368_v8 = vand.u32 8388607, %v361_v17 }
 0x15b   :  { %v663_v53 = vxor.u32 2147483648, %v1125_v51  ;;  %v935_v59 = vsel %vm933_vm2, %v934_v36, %v1626_v0  ;;  %v371_v47 = vadd.s32 1, %v1020_v40  ;;  %vm1654_vm4 = vcmp.le.f32.partialorder %v464_v4, 0.7853982 }
 0x15c   :  { %vm1027_vm1 = vcmp.lt.s32.totalorder %v1026_v6, 0  ;;  %v667_v16 = vsel %vm665_vm0, %v666_v13, %v1125_v51  ;;  %v936_v5 = vadd.s32 %v935_v59, %v931_v43  ;;  %vm466_vm5 = vcmp.lt.s32.totalorder %v1242_v23, 0 }
 0x15d   :  { %v535_v57 = vsel %vm1027_vm1, 0, %v1026_v6  ;;  %v664_v21 = vsel %vm662_vm15, %v1123_v49, %v663_v53  ;;  %vm372_vm3 = vcmp.gt.s32.totalorder %v371_v47, 0  ;;  %v551_v1 = vsel %vm466_vm5, %v550_v41, %v1609_v39 }
 0x15e   :  { %v536_v2 = vsub.s32 32, %v535_v57  ;;  %v540_v3 = vsub.s32 4294967266, %v535_v57  ;;  %v668_v18 = vsel %vm661_vm14, %v664_v21, %v667_v16  ;;  %v537_v63 = vshll.u32 %v528_v31, %v535_v57 }
 0x15f   :  { %v669_v38 = vsel %vm659_vm13, nan, %v668_v18  ;;  %v373_v22 = vsel %vm372_vm3, %v371_v47, 0  ;;  %v937_v20 = vadd.s32 536870912, %v936_v5  ;;  %v369_v15 = vor.u32 8388608, %v368_v8 }
 0x160   :  { %v538_v7 = vshrl.u32 %v520_v55, %v536_v2  ;;  %v541_v56 = vadd.s32 127, %v540_v3  ;;  %983 = vst [vmem:[#allocation2 + $0x20] sm:$0xff] %v669_v38  ;;  %v375_v25 = vand.u32 31, %v373_v22  ;;  %v776_v29 = vand.u32 2139095040, %v1249_v34 }
 0x161   :  { %v1659_v31 = vshrl.u32 %v937_v20, 30  ;;  %v374_v39 = vshrl.u32 %v373_v22, 5  ;;  %v553_v36 = vsel %vm1654_vm4, 0, %v551_v1  ;;  %v1681_v43 = vshll.u32 %v369_v15, 8 }
 0x162   :  { %v539_v33 = vor.u32 %v538_v7, %v537_v63  ;;  %v542_v35 = vshll.u32 %v541_v56, 23  ;;  %v376_v14 = vsub.s32 32, %v375_v25  ;;  %v378_v4 = vshll.u32 %v1166_v44, %v375_v25 }
 0x163   :  { %v939_v9 = vshll.u32 %v1659_v31, 30  ;;  %v381_v37 = vshll.u32 %v1167_v48, %v375_v25  ;;  %v384_v46 = vshll.u32 %v1168_v50, %v375_v25  ;;  %v387_v49 = vshll.u32 %v1169_v52, %v375_v25 }
 0x164   :  { %v543_v62 = vor.u32 4788187, %v542_v35  ;;  %v546_v42 = vcvt.s32.f32 %v539_v33  ;;  %v379_v0 = vshrl.u32 %v1167_v48, %v376_v14  ;;  %v382_v26 = vshrl.u32 %v1168_v50, %v376_v14 }
 0x165   :  { %v385_v58 = vshrl.u32 %v1169_v52, %v376_v14  ;;  %v388_v30 = vshrl.u32 %v1170_v54, %v376_v14  ;;  %v1671_v12 = vsub.s32 %v936_v5, %v939_v9  ;;  %v391_v55 = vshrl.u32 %v1171_v61, %v376_v14 }
 0x166   :  { %v544_v28 = vand.u32 2147483647, %v543_v62  ;;  %v380_v32 = vor.u32 %v379_v0, %v378_v4  ;;  %v383_v51 = vor.u32 %v382_v26, %v381_v37  ;;  %v390_v53 = vshll.u32 %v1170_v54, %v375_v25 }
 0x167   :  { %v942_v6 = vsub.s32 0, %v1671_v12  ;;  %v386_v13 = vor.u32 %v385_v58, %v384_v46  ;;  %v389_v40 = vor.u32 %v388_v30, %v387_v49  ;;  %v377_v57 = vshrl.u32 %v1166_v44, %v376_v14 }
 0x168   :  { %v547_v10 = vmul.f32 %v546_v42, %v544_v28  ;;  %vm393_vm6 = vcmp.lt.s32.totalorder %v374_v39, 1  ;;  %v777_v59 = vshrl.u32 %v776_v29, 23  ;;  %v392_v21 = vor.u32 %v391_v55, %v390_v53 }
 0x169   :  { %v1041_v16 = vmin.u32 %v942_v6, %v1671_v12  ;;  %vm394_vm7 = vcmp.lt.s32.totalorder %v374_v39, 2  ;;  %vm396_vm8 = vcmp.lt.s32.totalorder %v374_v39, 4  ;;  %v401_v18 = vsel %vm393_vm6, %v380_v32, %v383_v51 }
 0x16a   :  { %v548_v41 = vxor.u32 2147483648, %v547_v10  ;;  %v398_v8 = vsel %vm396_vm8, %v386_v13, 2102212464  ;;  %vm395_vm9 = vcmp.lt.s32.totalorder %v374_v39, 3  ;;  %v397_v63 = vsel %vm393_vm6, %v377_v57, %v380_v32 }
 0x16b   :  { %v944_v3 = vclz %v1041_v16  ;;  %v402_v5 = vsel %vm396_vm8, %v389_v40, 920167782  ;;  %v405_v56 = vsel %vm393_vm6, %v383_v51, %v386_v13  ;;  %v399_v22 = vsel %vm395_vm9, %v383_v51, %v398_v8 }
 0x16c   :  { %v549_v47 = vsel %vm466_vm5, %v548_v41, %v547_v10  ;;  %v403_v7 = vsel %vm395_vm9, %v386_v13, %v402_v5  ;;  %v406_v25 = vsel %vm396_vm8, %v392_v21, 1326507024  ;;  %v1036_v33 = vadd.s32 4294967169, %v777_v59 }
 0x16d   :  { %v552_v2 = vsel %vm1654_vm4, %v1242_v23, %v549_v47  ;;  %v1042_v38 = vadd.s32 4294967294, %v944_v3  ;;  %v404_v20 = vsel %vm394_vm7, %v401_v18, %v403_v7  ;;  %v407_v35 = vsel %vm395_vm9, %v389_v40, %v406_v25 }
 0x16e   :  { %1126 = vcosq.f32 %v552_v2  ;;  %v1695_v60 = vmul.u32.u64.low %v1681_v43, %v404_v20  ;;  %v1696_v14 = vmul.u32.u64.high %v1681_v43, %v404_v20, %v1695_v60  ;;  %v557_v62 = vand.u32 3, %v553_v36 }
 0x16f   :  { %1128 = vsinq.f32 %v552_v2  ;;  %vm1043_vm10 = vcmp.lt.s32.totalorder %v1042_v38, 0  ;;  %v408_v15 = vsel %vm394_vm7, %v405_v56, %v407_v35  ;;  %v783_v29 = vadd.s32 1, %v1036_v33 }
 0x170   :  { %v947_v1 = vsel %vm1043_vm10, 0, %v1042_v38  ;;  %v932_v42 = vadd.s32 %v1625_v19, %v1635_v45  ;;  %v400_v0 = vsel %vm394_vm7, %v397_v63, %v399_v22  ;;  %v419_v46 = vadd.s32 1, %v1696_v14 }
 0x171   :  { %v948_v9 = vsub.s32 32, %v947_v1  ;;  %v952_v4 = vsub.s32 4294967266, %v947_v1  ;;  %v949_v28 = vshll.u32 %v1671_v12, %v947_v1  ;;  %vm784_vm11 = vcmp.gt.s32.totalorder %v783_v29, 0 }
 0x172   :  { %v1705_v26 = vmul.u32.u64.low %v1681_v43, %v408_v15  ;;  %v1706_v58 = vmul.u32.u64.high %v1681_v43, %v408_v15, %v1705_v26  ;;  %v785_v10 = vsel %vm784_vm11, %v783_v29, 0  ;;  %vm556_vm12 = vweird.f32 %v1242_v23 }
 0x173   :  { %v950_v30 = vshrl.u32 %v932_v42, %v948_v9  ;;  %v953_v37 = vadd.s32 127, %v952_v4  ;;  %v787_v36 = vand.u32 31, %v785_v10  ;;  %vm878_vm13 = vcmp.lt.s32.totalorder %v1244_v24, 0 }
 0x174   :  { %v773_v39 = vand.u32 2147483647, %v1249_v34  ;;  %v962_v32 = vsub.s32 4, %v1659_v31  ;;  %v416_v49 = vmul.u32 %v1681_v43, %v400_v0  ;;  %vm418_vm14 = vc.u32 %v1706_v58, %v1695_v60 }
 0x175   :  { %v951_v19 = vor.u32 %v950_v30, %v949_v28  ;;  %v954_v45 = vshll.u32 %v953_v37, 23  ;;  %v788_v6 = vsub.s32 32, %v787_v36  ;;  %vm558_vm15 = vcmp.lt.s32.totalorder %v557_v62, 2 }
 0x176   :  { %vm1718_vm0 = vcmp.le.f32.partialorder %v876_v11, 0.7853982  ;;  %v420_v40 = vsel %vm418_vm14, %v419_v46, %v1696_v14  ;;  %vm559_vm1 = vcmp.eq.s32.totalorder %v557_v62, 0  ;;  %vm562_vm2 = vcmp.eq.s32.totalorder %v557_v62, 2 }
 0x177   :  { %v955_v41 = vor.u32 4788187, %v954_v45  ;;  %v421_v43 = vadd.s32 %v420_v40, %v416_v49  ;;  %v958_v59 = vcvt.s32.f32 %v951_v19  ;;  %v780_v47 = vand.u32 8388607, %v773_v39 }
 0x178   :  { %v1127_v12 = vpop.eup %1126  ;;  %v963_v11 = vsel %vm878_vm13, %v962_v32, %v1659_v31  ;;  %v791_v3 = vshrl.u32 %v1167_v48, %v788_v6  ;;  %v790_v63 = vshll.u32 %v1166_v44, %v787_v36  ;;  %v794_v5 = vshrl.u32 %v1168_v50, %v788_v6 }
 0x179   :  { %v1129_v51 = vpop.eup %1128  ;;  %v563_v13 = vxor.u32 2147483648, %v1127_v12  ;;  %v956_v57 = vand.u32 2147483647, %v955_v41  ;;  %v422_v2 = vadd.s32 536870912, %v421_v43  ;;  %v797_v56 = vshrl.u32 %v1169_v52, %v788_v6 }
 0x17a   :  { %v560_v53 = vxor.u32 2147483648, %v1129_v51  ;;  %v800_v22 = vshrl.u32 %v1170_v54, %v788_v6  ;;  %v793_v20 = vshll.u32 %v1167_v48, %v787_v36  ;;  %v799_v25 = vshll.u32 %v1169_v52, %v787_v36 }
 0x17b   :  { %v564_v16 = vsel %vm562_vm2, %v563_v13, %v1129_v51  ;;  %v959_v18 = vmul.f32 %v958_v59, %v956_v57  ;;  %v1734_v7 = vshrl.u32 %v422_v2, 30  ;;  %v803_v33 = vshrl.u32 %v1171_v61, %v788_v6 }
 0x17c   :  { %v561_v21 = vsel %vm559_vm1, %v1127_v12, %v560_v53  ;;  %v786_v14 = vshrl.u32 %v785_v10, 5  ;;  %v792_v62 = vor.u32 %v791_v3, %v790_v63  ;;  %v796_v23 = vshll.u32 %v1168_v50, %v787_v36 }
 0x17d   :  { %v565_v8 = vsel %vm558_vm15, %v561_v21, %v564_v16  ;;  %v960_v31 = vxor.u32 2147483648, %v959_v18  ;;  %v424_v35 = vshll.u32 %v1734_v7, 30  ;;  %v795_v15 = vor.u32 %v794_v5, %v793_v20 }
 0x17e   :  { %v566_v38 = vsel %vm556_vm12, nan, %v565_v8  ;;  %v801_v29 = vor.u32 %v800_v22, %v799_v25  ;;  %v802_v42 = vshll.u32 %v1170_v54, %v787_v36  ;;  %v965_v52 = vsel %vm1718_vm0, 0, %v963_v11 }
 0x17f   :  { %982 = vst [vmem:[#allocation2 + $0x18] sm:$0xff] %v566_v38  ;;  %v961_v1 = vsel %vm878_vm13, %v960_v31, %v959_v18  ;;  %v425_v61 = vsub.s32 %v421_v43, %v424_v35  ;;  %v798_v9 = vor.u32 %v797_v56, %v796_v23  ;;  %v781_v4 = vor.u32 8388608, %v780_v47 }
 0x180   :  { %v964_v48 = vsel %vm1718_vm0, %v1244_v24, %v961_v1  ;;  %v804_v0 = vor.u32 %v803_v33, %v802_v42  ;;  %vm805_vm3 = vcmp.lt.s32.totalorder %v786_v14, 1  ;;  %vm808_vm4 = vcmp.lt.s32.totalorder %v786_v14, 4 }
 0x181   :  { %1130 = vcosq.f32 %v964_v48  ;;  %v427_v50 = vsub.s32 0, %v425_v61  ;;  %v969_v28 = vand.u32 3, %v965_v52  ;;  %v789_v26 = vshrl.u32 %v1166_v44, %v788_v6 }
 0x182   :  { %1132 = vsinq.f32 %v964_v48  ;;  %v813_v54 = vsel %vm805_vm3, %v792_v62, %v795_v15  ;;  %v814_v30 = vsel %vm808_vm4, %v801_v29, 920167782  ;;  %vm807_vm5 = vcmp.lt.s32.totalorder %v786_v14, 3 }
 0x183   :  { %v1021_v37 = vmin.u32 %v427_v50, %v425_v61  ;;  %v810_v46 = vsel %vm808_vm4, %v798_v9, 2102212464  ;;  %v817_v10 = vsel %vm805_vm3, %v795_v15, %v798_v9  ;;  %vm806_vm6 = vcmp.lt.s32.totalorder %v786_v14, 2 }
 0x184   :  { %v815_v36 = vsel %vm807_vm5, %v798_v9, %v814_v30  ;;  %v818_v19 = vsel %vm808_vm4, %v804_v0, 1326507024  ;;  %v821_v45 = vshll.u32 %v781_v4, 8  ;;  %v809_v32 = vsel %vm805_vm3, %v789_v26, %v792_v62 }
 0x185   :  { %v429_v12 = vclz %v1021_v37  ;;  %v816_v49 = vsel %vm806_vm6, %v813_v54, %v815_v36  ;;  %v819_v51 = vsel %vm807_vm5, %v801_v29, %v818_v19  ;;  %v811_v13 = vsel %vm807_vm5, %v795_v15, %v810_v46 }
 0x186   :  { %v820_v55 = vsel %vm806_vm6, %v817_v10, %v819_v51  ;;  %v1752_v41 = vmul.u32.u64.low %v821_v45, %v816_v49  ;;  %v1753_v40 = vmul.u32.u64.high %v821_v45, %v816_v49, %v1752_v41  ;;  %v812_v43 = vsel %vm806_vm6, %v809_v32, %v811_v13 }
 0x187   :  { %v1022_v44 = vadd.s32 4294967294, %v429_v12  ;;  %v1755_v6 = vmul.u32.u64.low %v821_v45, %v820_v55  ;;  %v1756_v53 = vmul.u32.u64.high %v821_v45, %v820_v55, %v1755_v6  ;;  %vm971_vm8 = vcmp.eq.s32.totalorder %v969_v28, 0 }
 0x188   :  { %vm974_vm9 = vcmp.eq.s32.totalorder %v969_v28, 2  ;;  %v831_v59 = vadd.s32 1, %v1753_v40  ;;  %v417_v11 = vadd.s32 %v1695_v60, %v1706_v58  ;;  %v828_v63 = vmul.u32 %v821_v45, %v812_v43 }
 0x189   :  { %vm1023_vm7 = vcmp.lt.s32.totalorder %v1022_v44, 0  ;;  %vm830_vm10 = vc.u32 %v1756_v53, %v1752_v41  ;;  %vm970_vm11 = vcmp.lt.s32.totalorder %v969_v28, 2  ;;  %vm968_vm12 = vweird.f32 %v1244_v24 }
 0x18a   :  { %v432_v57 = vsel %vm1023_vm7, 0, %v1022_v44  ;;  %v832_v22 = vsel %vm830_vm10, %v831_v59, %v1753_v40  ;;  %vm363_vm13 = vcmp.lt.s32.totalorder %v1246_v27, 0  ;;  %vm1768_vm14 = vcmp.le.f32.partialorder %v361_v17, 0.7853982 }
 0x18b   :  { %v1131_v16 = vpop.eup %1130  ;;  %v433_v2 = vsub.s32 32, %v432_v57  ;;  %v437_v3 = vsub.s32 4294967266, %v432_v57  ;;  %v434_v18 = vshll.u32 %v425_v61, %v432_v57  ;;  %v833_v20 = vadd.s32 %v832_v22, %v828_v63 }
 0x18c   :  { %v1133_v47 = vpop.eup %1132  ;;  %v975_v21 = vxor.u32 2147483648, %v1131_v16  ;;  %v447_v9 = vsub.s32 4, %v1734_v7  ;;  %v829_v30 = vadd.s32 %v1752_v41, %v1756_v53  ;;  %vm453_vm3 = vweird.f32 %v1246_v27 }
 0x18d   :  { %v972_v8 = vxor.u32 2147483648, %v1133_v47  ;;  %v435_v38 = vshrl.u32 %v417_v11, %v433_v2  ;;  %v438_v56 = vadd.s32 127, %v437_v3  ;;  %v834_v35 = vadd.s32 536870912, %v833_v20 }
 0x18e   :  { %v976_v5 = vsel %vm974_vm9, %v975_v21, %v1133_v47  ;;  %v448_v28 = vsel %vm363_vm13, %v447_v9, %v1734_v7  ;;  %vm775_vm4 = vcmp.lt.s32.totalorder %v1249_v34, 0  ;;  %vm774_vm5 = vcmp.le.f32.partialorder %v773_v39, 0.7853982 }
 0x18f   :  { %v973_v31 = vsel %vm971_vm8, %v1131_v16, %v972_v8  ;;  %v436_v60 = vor.u32 %v435_v38, %v434_v18  ;;  %v439_v58 = vshll.u32 %v438_v56, 23  ;;  %v835_v62 = vshrl.u32 %v834_v35, 30 }
 0x190   :  { %v977_v25 = vsel %vm970_vm11, %v973_v31, %v976_v5  ;;  %v450_v17 = vsel %vm1768_vm14, 0, %v448_v28  ;;  %vm865_vm9 = vweird.f32 %v1249_v34 }
 0x191   :  { %v978_v33 = vsel %vm968_vm12, nan, %v977_v25  ;;  %v440_v14 = vor.u32 4788187, %v439_v58  ;;  %v443_v1 = vcvt.s32.f32 %v436_v60  ;;  %v836_v15 = vshll.u32 %v835_v62, 30 }
 0x192   :  { %986 = vst [vmem:[#allocation2 + $0x38] sm:$0xff] %v978_v33  ;;  %v454_v10 = vand.u32 3, %v450_v17  ;;  %v859_v47 = vsub.s32 4, %v835_v62 }
 0x193   :  { %v441_v23 = vand.u32 2147483647, %v440_v14  ;;  %v837_v42 = vsub.s32 %v833_v20, %v836_v15 }
 0x194   :  { %vm459_vm0 = vcmp.eq.s32.totalorder %v454_v10, 2  ;;  %vm456_vm1 = vcmp.eq.s32.totalorder %v454_v10, 0  ;;  %vm455_vm2 = vcmp.lt.s32.totalorder %v454_v10, 2  ;;  %v860_v11 = vsel %vm775_vm4, %v859_v47, %v835_v62 }
 0x195   :  { %v444_v29 = vmul.f32 %v443_v1, %v441_v23  ;;  %v839_v52 = vsub.s32 0, %v837_v42 }
 0x197   :  { %v445_v48 = vxor.u32 2147483648, %v444_v29  ;;  %v1037_v0 = vmin.u32 %v839_v52, %v837_v42 }
 0x199   :  { %v446_v61 = vsel %vm363_vm13, %v445_v48, %v444_v29  ;;  %v841_v50 = vclz %v1037_v0 }
 0x19a   :  { %v449_v4 = vsel %vm1768_vm14, %v1246_v27, %v446_v61  ;;  %v862_v27 = vsel %vm774_vm5, 0, %v860_v11 }
 0x19b   :  { %1134 = vcosq.f32 %v449_v4  ;;  %v1038_v26 = vadd.s32 4294967294, %v841_v50  ;;  %v866_v2 = vand.u32 3, %v862_v27 }
 0x19c   :  { %1136 = vsinq.f32 %v449_v4 }
 0x19d   :  { %vm1039_vm15 = vcmp.lt.s32.totalorder %v1038_v26, 0  ;;  %vm871_vm6 = vcmp.eq.s32.totalorder %v866_v2, 2  ;;  %vm868_vm7 = vcmp.eq.s32.totalorder %v866_v2, 0  ;;  %vm867_vm8 = vcmp.lt.s32.totalorder %v866_v2, 2 }
 0x19e   :  { %v844_v54 = vsel %vm1039_vm15, 0, %v1038_v26 }
 0x19f   :  { %v845_v37 = vsub.s32 32, %v844_v54  ;;  %v849_v46 = vsub.s32 4294967266, %v844_v54  ;;  %v846_v36 = vshll.u32 %v837_v42, %v844_v54 }
 0x1a1   :  { %v847_v19 = vshrl.u32 %v829_v30, %v845_v37  ;;  %v850_v45 = vadd.s32 127, %v849_v46 }
 0x1a3   :  { %v848_v51 = vor.u32 %v847_v19, %v846_v36  ;;  %v851_v13 = vshll.u32 %v850_v45, 23 }
 0x1a5   :  { %v1135_v12 = vpop.eup %1134  ;;  %v852_v40 = vor.u32 4788187, %v851_v13  ;;  %v855_v53 = vcvt.s32.f32 %v848_v51 }
 0x1a6   :  { %v1137_v32 = vpop.eup %1136  ;;  %v460_v49 = vxor.u32 2147483648, %v1135_v12 }
 0x1a7   :  { %v457_v7 = vxor.u32 2147483648, %v1137_v32  ;;  %v853_v6 = vand.u32 2147483647, %v852_v40 }
 0x1a8   :  { %v461_v55 = vsel %vm459_vm0, %v460_v49, %v1137_v32 }
 0x1a9   :  { %v458_v44 = vsel %vm456_vm1, %v1135_v12, %v457_v7  ;;  %v856_v16 = vmul.f32 %v855_v53, %v853_v6 }
 0x1aa   :  { %v462_v41 = vsel %vm455_vm2, %v458_v44, %v461_v55 }
 0x1ab   :  { %v463_v43 = vsel %vm453_vm3, nan, %v462_v41  ;;  %v857_v57 = vxor.u32 2147483648, %v856_v16 }
 0x1ac   :  { %981 = vst [vmem:[#allocation2 + $0x10] sm:$0xff] %v463_v43 }
 0x1ad   :  { %v858_v59 = vsel %vm775_vm4, %v857_v57, %v856_v16 }
 0x1ae   :  { %v861_v21 = vsel %vm774_vm5, %v1249_v34, %v858_v59 }
 0x1af   :  { %1138 = vcosq.f32 %v861_v21 }
 0x1b0   :  { %1140 = vsinq.f32 %v861_v21 }
 0x1b9   :  { %v1139_v3 = vpop.eup %1138 }
 0x1ba   :  { %v1141_v8 = vpop.eup %1140  ;;  %v872_v18 = vxor.u32 2147483648, %v1139_v3 }
 0x1bb   :  { %v869_v63 = vxor.u32 2147483648, %v1141_v8 }
 0x1bc   :  { %v873_v5 = vsel %vm871_vm6, %v872_v18, %v1141_v8 }
 0x1bd   :  { %v870_v39 = vsel %vm868_vm7, %v1139_v3, %v869_v63 }
 0x1be   :  { %v874_v38 = vsel %vm867_vm8, %v870_v39, %v873_v5 }
 0x1bf   :  { %v875_v56 = vsel %vm865_vm9, nan, %v874_v38 }
 0x1c0   :  { %985 = vst [vmem:[#allocation2 + $0x30] sm:$0xff] %v875_v56 }
 0x1c1   :  { %1153 = shalt.err (!%p1150_p4)
}
 0x1c2   :  { %s1154_s30 = scalar_lea.hbm %s1800_s2, 1024 }
 0x1c3   :  { %p1155_p5 = scmp.ne.s32.totalorder %s1800_s2, %s1154_s30  ;;  %p1158_p6 = scmp.lt.u32.totalorder %s1154_s30, %s1800_s2 }
 0x1c5   :  { %p1160_p7 = pnand %p1158_p6, %p1155_p5 }
 0x1c7   :  { %1163 = shalt.err (!%p1160_p7)
}
 0x1c8   :  { %s1173_s7 = smov 128   ;;  %s1174_s8 = smov 8  }
 0x1c9   :  { %998 = dma.vmem_to_hbm [thread:$0]  %s993_s26, 1024, %s1800_s2, [#allocation3], %s1173_s7, %s1173_s7, %s1174_s8  }
 0x1ca   :  { %1164 = dma.done.wait [#allocation3], 1024  }
 0x1cb   :  { %1165 = vsyncadd [#allocation3], 4294966272 }
 0x1cc   :  { %1002 = vsyncpa [#allocation3], 1 }

</bundles_post_ra>
